<compile_context>
chip_gen: v6e
topology: v6e:2x2x1
jax: 0.10.0
libtpu: 0.0.40
codegen_flags: <defaults>
</compile_context>

<pallas_src>
import functools

import jax
import jax.numpy as jnp
from jax.experimental import pallas as pl
from jax.experimental.pallas import tpu as pltpu


def _round_up(n: int, m: int) -> int:
    return (n + m - 1) // m * m


def nvdm_kernel(x_ref, eps_ref,
                enc_w, enc_b, mulv_w, mulv_b,
                fc1_w, fc1_b, d0_w, d0_b, d1_w, d1_b,
                xrec_ref, heads_ref, *, n_topic):
    """One batch tile of the full NVDM forward pass.

    x_ref      [TB, D]      compute dtype (bf16)
    eps_ref    [TB, T]      f32 reparameterization noise
    mulv_w     [H,  W2]     fused+padded [Wmu | Wlv | 0]
    fc1_w      [T,  Tp]     column-zero-padded fc1
    d0_w       [Tp, H]      row-zero-padded dec_0
    xrec_ref   [TB, D]      f32 output
    heads_ref  [TB, W2+Tp]  f32 packed [mu | log_var | pad | theta | pad]
    """
    T = n_topic
    cdt = x_ref.dtype                     # MXU operand dtype (bf16)
    x = x_ref[...]
    eps = eps_ref[...]

    # encoder enc_0 -> relu (dropout p=0.0 is identity)
    hid = jnp.dot(x, enc_w[...], preferred_element_type=jnp.float32) + enc_b[...]
    hid = jnp.maximum(hid, 0.0)

    # fused mu | log_var head: single lane-dense matmul
    mulv = jnp.dot(hid.astype(cdt), mulv_w[...],
                   preferred_element_type=jnp.float32) + mulv_b[...]
    mu = mulv[:, :T]
    lv = mulv[:, T:2 * T]

    # reparameterize in f32 (exp goes to the EUP; co-issues with VPU work)
    z = mu + eps * jnp.exp(lv * 0.5)

    # fc1 (output already padded to 128 lanes; pad lanes are exactly zero)
    theta = jnp.dot(z.astype(cdt), fc1_w[...],
                    preferred_element_type=jnp.float32) + fc1_b[...]

    # decoder: dec_0 -> relu -> dec_1 (zero pad rows of d0_w kill the pad lanes exactly)
    h2 = jnp.dot(theta.astype(cdt), d0_w[...],
                 preferred_element_type=jnp.float32) + d0_b[...]
    h2 = jnp.maximum(h2, 0.0)
    xrec = jnp.dot(h2.astype(cdt), d1_w[...],
                   preferred_element_type=jnp.float32) + d1_b[...]

    xrec_ref[...] = xrec
    # lane-dense packed small-head output; both pieces are multiples of 128 lanes
    heads_ref[...] = jnp.concatenate([mulv, theta], axis=-1)


def nvdm_forward(x, eps, params, *, block_b=256, compute_dtype=jnp.bfloat16):
    """x: [B, input_dim] f32, eps: [B, n_topic] f32.

    params: dict of Linear weights pre-transposed to [in, out] plus [1, out] biases.
    Returns (x_reconst, mu, log_var, theta2) in f32.
    """
    B, D = x.shape
    H = params["enc_w"].shape[1]
    T = params["fc1_w"].shape[1]

    cdt = compute_dtype

    # --- batch tiling: multiple of 16 rows (bf16 sublane packing), pad B up ---
    TB = min(block_b, _round_up(max(B, 1), 16))
    Bp = _round_up(B, TB)
    if Bp != B:
        x = jnp.pad(x, ((0, Bp - B), (0, 0)))
        eps = jnp.pad(eps, ((0, Bp - B), (0, 0)))

    # --- weight packing / padding (exact: pads are zeros) ---
    W2 = _round_up(2 * T, 128)            # fused mu|lv head width, lane-dense
    Tp = _round_up(T, 128)                # padded latent width for theta / dec_0

    def pad2(a, rows, cols):
        r, c = a.shape
        return jnp.pad(a, ((0, rows - r), (0, cols - c)))

    mulv_w = pad2(jnp.concatenate([params["mu_w"], params["lv_w"]], axis=1), H, W2)
    mulv_b = pad2(jnp.concatenate([params["mu_b"], params["lv_b"]], axis=1), 1, W2)
    fc1_w = pad2(params["fc1_w"], T, Tp)
    fc1_b = pad2(params["fc1_b"], 1, Tp)
    d0_w = pad2(params["d0_w"], Tp, H)

    args = (
        x.astype(cdt), eps.astype(jnp.float32),
        params["enc_w"].astype(cdt), params["enc_b"],
        mulv_w.astype(cdt), mulv_b,
        fc1_w.astype(cdt), fc1_b,
        d0_w.astype(cdt), params["d0_b"],
        params["d1_w"].astype(cdt), params["d1_b"],
    )

    P = W2 + Tp                            # packed heads width (256 for T=64)

    def batch_spec(n):
        return pl.BlockSpec((TB, n), lambda i: (i, 0))

    def resident(shape):
        # full weight/bias stays VMEM-resident across all batch tiles
        return pl.BlockSpec(shape, lambda i, _s=len(shape): (0,) * _s)

    in_specs = [
        batch_spec(D),            # x
        batch_spec(T),            # eps
        resident((D, H)), resident((1, H)),      # enc_0
        resident((H, W2)), resident((1, W2)),    # fused mu|lv
        resident((T, Tp)), resident((1, Tp)),    # fc1 (padded)
        resident((Tp, H)), resident((1, H)),     # dec_0 (padded)
        resident((H, D)), resident((1, D)),      # dec_1
    ]
    out_specs = (batch_spec(D), batch_spec(P))
    out_shapes = (
        jax.ShapeDtypeStruct((Bp, D), jnp.float32),   # x_reconst
        jax.ShapeDtypeStruct((Bp, P), jnp.float32),   # packed [mu | lv | pad | theta | pad]
    )

    xrec, heads = pl.pallas_call(
        functools.partial(nvdm_kernel, n_topic=T),
        grid=(Bp // TB,),
        out_shape=out_shapes,
        in_specs=in_specs,
        out_specs=out_specs,
        compiler_params=pltpu.CompilerParams(
            dimension_semantics=("parallel",)),
    )(*args)

    mu = heads[:B, :T]
    log_var = heads[:B, T:2 * T]
    theta2 = heads[:B, W2:W2 + T]
    return xrec[:B], mu, log_var, theta2


def init_params(key, input_dim, hidden, n_topic):
    """Deterministic init mirroring the PyTorch module: weights ~ N(0, 0.01), biases 0.
    Weights stored pre-transposed as [in, out]. (fc1 uses PyTorch default init in the
    original; deterministic N(0, 0.01) here.)"""
    ks = jax.random.split(key, 6)

    def w(k, din, dout):
        return jax.random.normal(k, (din, dout), jnp.float32) * 0.01

    def b(dout):
        return jnp.zeros((1, dout), jnp.float32)

    return {
        "enc_w": w(ks[0], input_dim, hidden), "enc_b": b(hidden),
        "mu_w":  w(ks[1], hidden, n_topic),   "mu_b":  b(n_topic),
        "lv_w":  w(ks[2], hidden, n_topic),   "lv_b":  b(n_topic),
        "fc1_w": w(ks[3], n_topic, n_topic),  "fc1_b": b(n_topic),
        "d0_w":  w(ks[4], n_topic, hidden),   "d0_b":  b(hidden),
        "d1_w":  w(ks[5], hidden, input_dim), "d1_b":  b(input_dim),
    }


if __name__ == "__main__":
    # Small shapes consistent with NVDM: config.input_dim=256, config.topic=64, hidden=128
    B, INPUT_DIM, HIDDEN, N_TOPIC = 8, 256, 128, 64

    key = jax.random.PRNGKey(0)
    k_x, k_eps, k_p = jax.random.split(key, 3)

    x = jax.random.normal(k_x, (B, INPUT_DIM), jnp.float32)
    eps = jax.random.normal(k_eps, (B, N_TOPIC), jnp.float32)   # reparameterization noise
    params = init_params(k_p, INPUT_DIM, HIDDEN, N_TOPIC)

    x_reconst, mu, log_var, theta2 = nvdm_forward(x, eps, params)
    jax.block_until_ready((x_reconst, mu, log_var, theta2))

    assert x_reconst.shape == (B, INPUT_DIM)
    assert mu.shape == (B, N_TOPIC) and log_var.shape == (B, N_TOPIC)
    assert theta2.shape == (B, N_TOPIC)

    # plain-JAX f32 reference; tolerances loosened because the kernel uses bf16 MXU
    # operands with f32 accumulation.
    h = jnp.maximum(x @ params["enc_w"] + params["enc_b"], 0.0)
    mu_r = h @ params["mu_w"] + params["mu_b"]
    lv_r = h @ params["lv_w"] + params["lv_b"]
    z_r = mu_r + eps * jnp.exp(lv_r * 0.5)
    th_r = z_r @ params["fc1_w"] + params["fc1_b"]
    xr_r = (jnp.maximum(th_r @ params["d0_w"] + params["d0_b"], 0.0)
            @ params["d1_w"] + params["d1_b"])

    assert bool(jnp.allclose(mu, mu_r, atol=5e-3, rtol=0.0)), "mu mismatch"
    assert bool(jnp.allclose(log_var, lv_r, atol=5e-3, rtol=0.0)), "log_var mismatch"
    assert bool(jnp.allclose(theta2, th_r, atol=1e-2, rtol=0.0)), "theta2 mismatch"
    assert bool(jnp.allclose(x_reconst, xr_r, atol=2e-3, rtol=0.0)), "x_reconst mismatch"

    print("KERNEL_OK")
</pallas_src>

<mosaic_0001>
module attributes {stable_mosaic.version = 11 : i64} {
  func.func @nvdm_kernel(%arg0: i32, %arg1: memref<16x256xbf16, #tpu.memory_space<vmem>>, %arg2: memref<16x64xf32, #tpu.memory_space<vmem>>, %arg3: memref<256x128xbf16, #tpu.memory_space<vmem>>, %arg4: memref<1x128xf32, #tpu.memory_space<vmem>>, %arg5: memref<128x128xbf16, #tpu.memory_space<vmem>>, %arg6: memref<1x128xf32, #tpu.memory_space<vmem>>, %arg7: memref<64x128xbf16, #tpu.memory_space<vmem>>, %arg8: memref<1x128xf32, #tpu.memory_space<vmem>>, %arg9: memref<128x128xbf16, #tpu.memory_space<vmem>>, %arg10: memref<1x128xf32, #tpu.memory_space<vmem>>, %arg11: memref<128x256xbf16, #tpu.memory_space<vmem>>, %arg12: memref<1x256xf32, #tpu.memory_space<vmem>>, %arg13: memref<16x256xf32, #tpu.memory_space<vmem>>, %arg14: memref<16x256xf32, #tpu.memory_space<vmem>>) attributes {dimension_semantics = [#tpu.dimension_semantics<parallel>], iteration_bounds = array<i64: 1>, scalar_prefetch = 0 : i64, scratch_operands = 0 : i64, tpu.core_type = #tpu.core_type<tc>, window_params = [{transform_indices = @transform_0, window_bounds = array<i64: 16, 256>}, {transform_indices = @transform_1, window_bounds = array<i64: 16, 64>}, {pipeline_mode = #tpu.pipeline_mode<synchronous>, transform_indices = @transform_2, window_bounds = array<i64: 256, 128>}, {pipeline_mode = #tpu.pipeline_mode<synchronous>, transform_indices = @transform_3, window_bounds = array<i64: 1, 128>}, {pipeline_mode = #tpu.pipeline_mode<synchronous>, transform_indices = @transform_4, window_bounds = array<i64: 128, 128>}, {pipeline_mode = #tpu.pipeline_mode<synchronous>, transform_indices = @transform_5, window_bounds = array<i64: 1, 128>}, {pipeline_mode = #tpu.pipeline_mode<synchronous>, transform_indices = @transform_6, window_bounds = array<i64: 64, 128>}, {pipeline_mode = #tpu.pipeline_mode<synchronous>, transform_indices = @transform_7, window_bounds = array<i64: 1, 128>}, {pipeline_mode = #tpu.pipeline_mode<synchronous>, transform_indices = @transform_8, window_bounds = array<i64: 128, 128>}, {pipeline_mode = #tpu.pipeline_mode<synchronous>, transform_indices = @transform_9, window_bounds = array<i64: 1, 128>}, {pipeline_mode = #tpu.pipeline_mode<synchronous>, transform_indices = @transform_10, window_bounds = array<i64: 128, 256>}, {pipeline_mode = #tpu.pipeline_mode<synchronous>, transform_indices = @transform_11, window_bounds = array<i64: 1, 256>}, {transform_indices = @transform_12, window_bounds = array<i64: 16, 256>}, {transform_indices = @transform_13, window_bounds = array<i64: 16, 256>}]} {
    %c0 = arith.constant 0 : index
    %c0_0 = arith.constant 0 : index
    %0 = vector.load %arg1[%c0, %c0_0] : memref<16x256xbf16, #tpu.memory_space<vmem>>, vector<16x256xbf16>
    %c0_1 = arith.constant 0 : index
    %c0_2 = arith.constant 0 : index
    %1 = vector.load %arg2[%c0_1, %c0_2] : memref<16x64xf32, #tpu.memory_space<vmem>>, vector<16x64xf32>
    %c0_3 = arith.constant 0 : index
    %c0_4 = arith.constant 0 : index
    %2 = vector.load %arg3[%c0_3, %c0_4] : memref<256x128xbf16, #tpu.memory_space<vmem>>, vector<256x128xbf16>
    %cst = arith.constant dense<0.000000e+00> : vector<16x128xf32>
    %3 = tpu.matmul %0, %2, %cst {dimension_numbers = #tpu.dot_dimension_numbers<[1], [0], [0], [1], [0, 0, 1, 1], [], []>} : vector<16x256xbf16>, vector<256x128xbf16>, vector<16x128xf32> -> vector<16x128xf32>
    %c0_5 = arith.constant 0 : index
    %c0_6 = arith.constant 0 : index
    %4 = vector.load %arg4[%c0_5, %c0_6] : memref<1x128xf32, #tpu.memory_space<vmem>>, vector<1x128xf32>
    %5 = vector.broadcast %4 : vector<1x128xf32> to vector<16x128xf32>
    %6 = arith.addf %3, %5 : vector<16x128xf32>
    %cst_7 = arith.constant 0.000000e+00 : f32
    %7 = vector.broadcast %cst_7 : f32 to vector<16x128xf32>
    %8 = arith.maximumf %6, %7 : vector<16x128xf32>
    %9 = arith.truncf %8 : vector<16x128xf32> to vector<16x128xbf16>
    %c0_8 = arith.constant 0 : index
    %c0_9 = arith.constant 0 : index
    %10 = vector.load %arg5[%c0_8, %c0_9] : memref<128x128xbf16, #tpu.memory_space<vmem>>, vector<128x128xbf16>
    %cst_10 = arith.constant dense<0.000000e+00> : vector<16x128xf32>
    %11 = tpu.matmul %9, %10, %cst_10 {dimension_numbers = #tpu.dot_dimension_numbers<[1], [0], [0], [1], [0, 0, 1, 1], [], []>} : vector<16x128xbf16>, vector<128x128xbf16>, vector<16x128xf32> -> vector<16x128xf32>
    %c0_11 = arith.constant 0 : index
    %c0_12 = arith.constant 0 : index
    %12 = vector.load %arg6[%c0_11, %c0_12] : memref<1x128xf32, #tpu.memory_space<vmem>>, vector<1x128xf32>
    %13 = vector.broadcast %12 : vector<1x128xf32> to vector<16x128xf32>
    %14 = arith.addf %11, %13 : vector<16x128xf32>
    %15 = vector.extract_strided_slice %14 {offsets = [0, 0], sizes = [16, 64], strides = [1, 1]} : vector<16x128xf32> to vector<16x64xf32>
    %16 = vector.extract_strided_slice %14 {offsets = [0, 64], sizes = [16, 64], strides = [1, 1]} : vector<16x128xf32> to vector<16x64xf32>
    %cst_13 = arith.constant 5.000000e-01 : f32
    %17 = vector.broadcast %cst_13 : f32 to vector<16x64xf32>
    %18 = arith.mulf %16, %17 : vector<16x64xf32>
    %19 = math.exp %18 : vector<16x64xf32>
    %20 = arith.mulf %1, %19 : vector<16x64xf32>
    %21 = arith.addf %15, %20 : vector<16x64xf32>
    %22 = arith.truncf %21 : vector<16x64xf32> to vector<16x64xbf16>
    %c0_14 = arith.constant 0 : index
    %c0_15 = arith.constant 0 : index
    %23 = vector.load %arg7[%c0_14, %c0_15] : memref<64x128xbf16, #tpu.memory_space<vmem>>, vector<64x128xbf16>
    %cst_16 = arith.constant dense<0.000000e+00> : vector<16x128xf32>
    %24 = tpu.matmul %22, %23, %cst_16 {dimension_numbers = #tpu.dot_dimension_numbers<[1], [0], [0], [1], [0, 0, 1, 1], [], []>} : vector<16x64xbf16>, vector<64x128xbf16>, vector<16x128xf32> -> vector<16x128xf32>
    %c0_17 = arith.constant 0 : index
    %c0_18 = arith.constant 0 : index
    %25 = vector.load %arg8[%c0_17, %c0_18] : memref<1x128xf32, #tpu.memory_space<vmem>>, vector<1x128xf32>
    %26 = vector.broadcast %25 : vector<1x128xf32> to vector<16x128xf32>
    %27 = arith.addf %24, %26 : vector<16x128xf32>
    %28 = arith.truncf %27 : vector<16x128xf32> to vector<16x128xbf16>
    %c0_19 = arith.constant 0 : index
    %c0_20 = arith.constant 0 : index
    %29 = vector.load %arg9[%c0_19, %c0_20] : memref<128x128xbf16, #tpu.memory_space<vmem>>, vector<128x128xbf16>
    %cst_21 = arith.constant dense<0.000000e+00> : vector<16x128xf32>
    %30 = tpu.matmul %28, %29, %cst_21 {dimension_numbers = #tpu.dot_dimension_numbers<[1], [0], [0], [1], [0, 0, 1, 1], [], []>} : vector<16x128xbf16>, vector<128x128xbf16>, vector<16x128xf32> -> vector<16x128xf32>
    %c0_22 = arith.constant 0 : index
    %c0_23 = arith.constant 0 : index
    %31 = vector.load %arg10[%c0_22, %c0_23] : memref<1x128xf32, #tpu.memory_space<vmem>>, vector<1x128xf32>
    %32 = vector.broadcast %31 : vector<1x128xf32> to vector<16x128xf32>
    %33 = arith.addf %30, %32 : vector<16x128xf32>
    %cst_24 = arith.constant 0.000000e+00 : f32
    %34 = vector.broadcast %cst_24 : f32 to vector<16x128xf32>
    %35 = arith.maximumf %33, %34 : vector<16x128xf32>
    %36 = arith.truncf %35 : vector<16x128xf32> to vector<16x128xbf16>
    %c0_25 = arith.constant 0 : index
    %c0_26 = arith.constant 0 : index
    %37 = vector.load %arg11[%c0_25, %c0_26] : memref<128x256xbf16, #tpu.memory_space<vmem>>, vector<128x256xbf16>
    %cst_27 = arith.constant dense<0.000000e+00> : vector<16x256xf32>
    %38 = tpu.matmul %36, %37, %cst_27 {dimension_numbers = #tpu.dot_dimension_numbers<[1], [0], [0], [1], [0, 0, 1, 1], [], []>} : vector<16x128xbf16>, vector<128x256xbf16>, vector<16x256xf32> -> vector<16x256xf32>
    %c0_28 = arith.constant 0 : index
    %c0_29 = arith.constant 0 : index
    %39 = vector.load %arg12[%c0_28, %c0_29] : memref<1x256xf32, #tpu.memory_space<vmem>>, vector<1x256xf32>
    %40 = vector.broadcast %39 : vector<1x256xf32> to vector<16x256xf32>
    %41 = arith.addf %38, %40 : vector<16x256xf32>
    %c0_30 = arith.constant 0 : index
    %c0_31 = arith.constant 0 : index
    %42 = vector.load %arg13[%c0_30, %c0_31] : memref<16x256xf32, #tpu.memory_space<vmem>>, vector<16x256xf32>
    tpu.vector_store %arg13[%c0_30, %c0_31], %41 {strides = array<i32>} : memref<16x256xf32, #tpu.memory_space<vmem>>, vector<16x256xf32>,
    %43 = tpu.concatenate %14, %27 in 1 : vector<16x128xf32>, vector<16x128xf32> -> vector<16x256xf32>
    %c0_32 = arith.constant 0 : index
    %c0_33 = arith.constant 0 : index
    %44 = vector.load %arg14[%c0_32, %c0_33] : memref<16x256xf32, #tpu.memory_space<vmem>>, vector<16x256xf32>
    tpu.vector_store %arg14[%c0_32, %c0_33], %43 {strides = array<i32>} : memref<16x256xf32, #tpu.memory_space<vmem>>, vector<16x256xf32>,
    return
  }
  func.func @transform_0(%arg0: i32) -> (i32, i32) {
    %c0_i32 = arith.constant 0 : i32
    %c0_i32_0 = arith.constant 0 : i32
    return %arg0, %c0_i32 : i32, i32
  }
  func.func @transform_1(%arg0: i32) -> (i32, i32) {
    %c0_i32 = arith.constant 0 : i32
    %c0_i32_0 = arith.constant 0 : i32
    return %arg0, %c0_i32 : i32, i32
  }
  func.func @transform_2(%arg0: i32) -> (i32, i32) {
    %c0_i32 = arith.constant 0 : i32
    %c0_i32_0 = arith.constant 0 : i32
    %c0_i32_1 = arith.constant 0 : i32
    return %c0_i32, %c0_i32_0 : i32, i32
  }
  func.func @transform_3(%arg0: i32) -> (i32, i32) {
    %c0_i32 = arith.constant 0 : i32
    %c0_i32_0 = arith.constant 0 : i32
    %c0_i32_1 = arith.constant 0 : i32
    return %c0_i32, %c0_i32_0 : i32, i32
  }
  func.func @transform_4(%arg0: i32) -> (i32, i32) {
    %c0_i32 = arith.constant 0 : i32
    %c0_i32_0 = arith.constant 0 : i32
    %c0_i32_1 = arith.constant 0 : i32
    return %c0_i32, %c0_i32_0 : i32, i32
  }
  func.func @transform_5(%arg0: i32) -> (i32, i32) {
    %c0_i32 = arith.constant 0 : i32
    %c0_i32_0 = arith.constant 0 : i32
    %c0_i32_1 = arith.constant 0 : i32
    return %c0_i32, %c0_i32_0 : i32, i32
  }
  func.func @transform_6(%arg0: i32) -> (i32, i32) {
    %c0_i32 = arith.constant 0 : i32
    %c0_i32_0 = arith.constant 0 : i32
    %c0_i32_1 = arith.constant 0 : i32
    return %c0_i32, %c0_i32_0 : i32, i32
  }
  func.func @transform_7(%arg0: i32) -> (i32, i32) {
    %c0_i32 = arith.constant 0 : i32
    %c0_i32_0 = arith.constant 0 : i32
    %c0_i32_1 = arith.constant 0 : i32
    return %c0_i32, %c0_i32_0 : i32, i32
  }
  func.func @transform_8(%arg0: i32) -> (i32, i32) {
    %c0_i32 = arith.constant 0 : i32
    %c0_i32_0 = arith.constant 0 : i32
    %c0_i32_1 = arith.constant 0 : i32
    return %c0_i32, %c0_i32_0 : i32, i32
  }
  func.func @transform_9(%arg0: i32) -> (i32, i32) {
    %c0_i32 = arith.constant 0 : i32
    %c0_i32_0 = arith.constant 0 : i32
    %c0_i32_1 = arith.constant 0 : i32
    return %c0_i32, %c0_i32_0 : i32, i32
  }
  func.func @transform_10(%arg0: i32) -> (i32, i32) {
    %c0_i32 = arith.constant 0 : i32
    %c0_i32_0 = arith.constant 0 : i32
    %c0_i32_1 = arith.constant 0 : i32
    return %c0_i32, %c0_i32_0 : i32, i32
  }
  func.func @transform_11(%arg0: i32) -> (i32, i32) {
    %c0_i32 = arith.constant 0 : i32
    %c0_i32_0 = arith.constant 0 : i32
    %c0_i32_1 = arith.constant 0 : i32
    return %c0_i32, %c0_i32_0 : i32, i32
  }
  func.func @transform_12(%arg0: i32) -> (i32, i32) {
    %c0_i32 = arith.constant 0 : i32
    %c0_i32_0 = arith.constant 0 : i32
    return %arg0, %c0_i32 : i32, i32
  }
  func.func @transform_13(%arg0: i32) -> (i32, i32) {
    %c0_i32 = arith.constant 0 : i32
    %c0_i32_0 = arith.constant 0 : i32
    return %arg0, %c0_i32 : i32, i32
  }
}

</mosaic_0001>

<bundles_post_ra>
// kernel: tpu_custom_call.1
= control target key start
LH: loop header
LB: loop body
LE: loop exit
PB: predicated region body
PF: predicated region fallthrough
CT: control target
= control target key end

     0   :  { %19 = vsyncpa [#allocation3], 0  ;;  %s1478_s0 = inlined_call_operand.hbm [shape: bf16[16,256], index: 0, kind: input, shape index: {}]   ;;  %s1479_s1 = inlined_call_operand.hbm [shape: f32[16,64], index: 1, kind: input, shape index: {}]   ;;  %s1480_s2 = inlined_call_operand.hbm [shape: bf16[256,128], index: 2, kind: input, shape index: {}]   ;;  %s1481_s3 = inlined_call_operand.vmem [shape: f32[1,128], index: 3, kind: input, shape index: {}]   ;;  %s1482_s4 = inlined_call_operand.hbm [shape: bf16[128,128], index: 4, kind: input, shape index: {}]   ;;  %s1483_s5 = inlined_call_operand.vmem [shape: f32[1,128], index: 5, kind: input, shape index: {}]   ;;  %s1484_s6 = inlined_call_operand.hbm [shape: bf16[64,128], index: 6, kind: input, shape index: {}]   ;;  %s1485_s7 = inlined_call_operand.vmem [shape: f32[1,128], index: 7, kind: input, shape index: {}]   ;;  %s1486_s8 = inlined_call_operand.hbm [shape: bf16[128,128], index: 8, kind: input, shape index: {}]   ;;  %s1487_s9 = inlined_call_operand.vmem [shape: f32[1,128], index: 9, kind: input, shape index: {}]   ;;  %s1488_s10 = inlined_call_operand.hbm [shape: bf16[128,256], index: 10, kind: input, shape index: {}]   ;;  %s1489_s11 = inlined_call_operand.vmem [shape: f32[1,256], index: 11, kind: input, shape index: {}]   ;;  %s1490_s12 = inlined_call_operand.hbm [shape: f32[16,256], index: 12, kind: output, shape index: {0}]   ;;  %s1491_s13 = inlined_call_operand.hbm [shape: f32[16,256], index: 13, kind: output, shape index: {1}]  }
   0x1   :  { %20 = vsyncpa [#allocation6], 0 }
   0x2   :  { %21 = vsyncpa [#allocation9], 0 }
   0x3   :  { %22 = vsyncpa [#allocation12], 0 }
   0x4   :  { %23 = vsyncpa [#allocation4], 0 }
   0x5   :  { %24 = vsyncpa [#allocation16], 0  ;;  %s1293_s25 = smov [#allocation5]  }
   0x6   :  { %s42_s26 = sshll.u32 %s1293_s25, 4  ;;  %s43_s26 = int_to_ptr.vmem [resolvable:$true] %s42_s26 }
   0x7   :  { %s1109_s27 = scalar_lea.vmem %s43_s26, 256  ;;  %p1114_p1 = scmp.lt.s32.totalorder %s43_s26, %s43_s26 }
   0x8   :  { %p1110_p0 = scmp.ne.s32.totalorder %s43_s26, %s1109_s27  ;;  %p1115_p2 = scmp.lt.s32.totalorder %s1109_s27, %s1109_s27 }
   0xa   :  { %p1116_p3 = por %p1115_p2, %p1114_p1 }
   0xc   :  { %p1117_p4 = pnand %p1116_p3, %p1110_p0 }
   0xe   :  { %1120 = shalt.err (!%p1117_p4)
}
   0xf   :  { %s1294_s28 = smov 128   ;;  %s1295_s29 = smov 8  }
  0x10   :  { %48 = dma.hbm_to_vmem [thread:$0]  %s1479_s1, 256, %s43_s26, [#allocation6], %s1294_s28, %s1294_s28, %s1295_s29  }
  0x11   :  { %s1296_s15 = smov [#allocation8]   ;;  %s1297_s17 = smov [#allocation11]  }
  0x12   :  { %s68_s16 = sshll.u32 %s1296_s15, 4  ;;  %s96_s18 = sshll.u32 %s1297_s17, 4  ;;  %s69_s16 = int_to_ptr.vmem [resolvable:$true] %s68_s16  ;;  %s97_s18 = int_to_ptr.vmem [resolvable:$true] %s96_s18 }
  0x13   :  { %s1129_s19 = scalar_lea.vmem %s69_s16, 1024  ;;  %p1134_p6 = scmp.lt.s32.totalorder %s69_s16, %s69_s16 }
  0x14   :  { %p1130_p5 = scmp.ne.s32.totalorder %s69_s16, %s1129_s19  ;;  %p1135_p7 = scmp.lt.s32.totalorder %s1129_s19, %s1129_s19 }
  0x16   :  { %p1136_p8 = por %p1135_p7, %p1134_p6 }
  0x18   :  { %p1137_p9 = pnand %p1136_p8, %p1130_p5 }
  0x1a   :  { %1140 = shalt.err (!%p1137_p9)
}
  0x1b   :  { %s1298_s20 = smov 64   ;;  %s1299_s21 = smov 4  }
  0x1c   :  { %74 = dma.hbm_to_vmem [thread:$0]  %s1482_s4, 1024, %s69_s16, [#allocation9], %s1298_s20, %s1298_s20, %s1299_s21  }
  0x1d   :  { %s1149_s1 = scalar_lea.vmem %s97_s18, 1024  ;;  %p1154_p11 = scmp.lt.s32.totalorder %s97_s18, %s97_s18 }
  0x1e   :  { %p1150_p10 = scmp.ne.s32.totalorder %s97_s18, %s1149_s1  ;;  %p1155_p12 = scmp.lt.s32.totalorder %s1149_s1, %s1149_s1 }
  0x20   :  { %p1156_p13 = por %p1155_p12, %p1154_p11 }
  0x22   :  { %p1157_p0 = pnand %p1156_p13, %p1150_p10 }
  0x24   :  { %1160 = shalt.err (!%p1157_p0)
}
  0x25   :  { %102 = dma.hbm_to_vmem [thread:$0]  %s1486_s8, 1024, %s97_s18, [#allocation12], %s1298_s20, %s1298_s20, %s1299_s21  }
  0x26   :  { %s1300_s26 = smov [#allocation2]   ;;  %s1301_s30 = smov [#allocation7]  }
  0x27   :  { %s30_s27 = sshll.u32 %s1300_s26, 4  ;;  %s54_s4 = sshll.u32 %s1301_s30, 4  ;;  %s31_s27 = int_to_ptr.vmem [resolvable:$true] %s30_s27  ;;  %s55_s4 = int_to_ptr.vmem [resolvable:$true] %s54_s4 }
  0x28   :  { %s1169_s14 = scalar_lea.vmem %s31_s27, 256  ;;  %p1174_p2 = scmp.lt.s32.totalorder %s31_s27, %s31_s27 }
  0x29   :  { %p1170_p1 = scmp.ne.s32.totalorder %s31_s27, %s1169_s14  ;;  %p1175_p3 = scmp.lt.s32.totalorder %s1169_s14, %s1169_s14 }
  0x2b   :  { %p1176_p4 = por %p1175_p3, %p1174_p2 }
  0x2d   :  { %p1177_p5 = pnand %p1176_p4, %p1170_p1 }
  0x2f   :  { %1180 = shalt.err (!%p1177_p5)
}
  0x30   :  { %36 = dma.hbm_to_vmem [thread:$0]  %s1478_s0, 256, %s31_s27, [#allocation3], %s1294_s28, %s1294_s28, %s1295_s29  }
  0x31   :  { %s1189_s8 = scalar_lea.vmem %s55_s4, 2048  ;;  %p1194_p7 = scmp.lt.s32.totalorder %s55_s4, %s55_s4 }
  0x32   :  { %p1190_p6 = scmp.ne.s32.totalorder %s55_s4, %s1189_s8  ;;  %p1195_p8 = scmp.lt.s32.totalorder %s1189_s8, %s1189_s8 }
  0x34   :  { %p1196_p9 = por %p1195_p8, %p1194_p7 }
  0x36   :  { %p1197_p10 = pnand %p1196_p9, %p1190_p6 }
  0x38   :  { %1200 = shalt.err (!%p1197_p10)
}
  0x39   :  { %60 = dma.hbm_to_vmem [thread:$0]  %s1480_s2, 2048, %s55_s4, [#allocation6], %s1298_s20, %s1298_s20, %s1299_s21  }
  0x3a   :  { %s1302_s19 = smov [#allocation10]   ;;  %s1303_s23 = smov [#allocation13]  }
  0x3b   :  { %s82_s22 = sshll.u32 %s1302_s19, 4  ;;  %s110_s0 = sshll.u32 %s1303_s23, 4  ;;  %s83_s22 = int_to_ptr.vmem [resolvable:$true] %s82_s22  ;;  %s111_s0 = int_to_ptr.vmem [resolvable:$true] %s110_s0 }
  0x3c   :  { %s1209_s1 = scalar_lea.vmem %s83_s22, 512  ;;  %p1214_p12 = scmp.lt.s32.totalorder %s83_s22, %s83_s22 }
  0x3d   :  { %p1210_p11 = scmp.ne.s32.totalorder %s83_s22, %s1209_s1  ;;  %p1215_p13 = scmp.lt.s32.totalorder %s1209_s1, %s1209_s1 }
  0x3f   :  { %p1216_p0 = por %p1215_p13, %p1214_p12 }
  0x41   :  { %p1217_p1 = pnand %p1216_p0, %p1210_p11 }
  0x43   :  { %1220 = shalt.err (!%p1217_p1)
}
  0x44   :  { %88 = dma.hbm_to_vmem [thread:$0]  %s1484_s6, 512, %s83_s22, [#allocation9], %s1298_s20, %s1298_s20, %s1299_s21  }
  0x45   :  { %s1229_s2 = scalar_lea.vmem %s111_s0, 2048  ;;  %p1234_p3 = scmp.lt.s32.totalorder %s111_s0, %s111_s0 }
  0x46   :  { %p1230_p2 = scmp.ne.s32.totalorder %s111_s0, %s1229_s2  ;;  %p1235_p4 = scmp.lt.s32.totalorder %s1229_s2, %s1229_s2 }
  0x48   :  { %p1236_p5 = por %p1235_p4, %p1234_p3 }
  0x4a   :  { %p1237_p6 = pnand %p1236_p5, %p1230_p2 }
  0x4c   :  { %1240 = shalt.err (!%p1237_p6)
}
  0x4d   :  { %116 = dma.hbm_to_vmem [thread:$0]  %s1488_s10, 2048, %s111_s0, [#allocation12], %s1294_s28, %s1294_s28, %s1295_s29  }
  0x4e   :  { %1281 = dma.done.wait [#allocation3], 256  }
  0x4f   :  { %1282 = vsyncadd [#allocation3], 4294967040 }
  0x50   :  { %1283 = dma.done.wait [#allocation6], 2304  }
  0x51   :  { %1284 = vsyncadd [#allocation6], 4294964992 }
  0x52   :  { %1285 = dma.done.wait [#allocation9], 1536  }
  0x53   :  { %1286 = vsyncadd [#allocation9], 4294965760 }
  0x54   :  { %1287 = dma.done.wait [#allocation12], 3072  }
  0x55   :  { %1288 = vsyncadd [#allocation12], 4294964224  ;;  %v1304_v0 = vmov 0.0   ;;  %v1034_v1 = vld [vmem:[#allocation7 + $0x78] sm:$0xff]   ;;  %v1036_v3 = vld [vmem:[#allocation7 + $0x70] sm:$0xff]   ;;  %vm1305_vm0 = vmmov 0  }
  0x56   :  { %964 = vmatprep.subr.bf16.mxu1 %v1304_v0  ;;  %v1035_v2 = vld [vmem:[#allocation7 + $0x38] sm:$0xff]   ;;  %919 = vmatprep.subr.bf16.mxu0 %v1034_v1  ;;  %v1037_v4 = vld [vmem:[#allocation7 + $0x30] sm:$0xff]   ;;  %v1038_v5 = vld [vmem:[#allocation7 + $0x68] sm:$0xff]   ;;  %vm504_vm1 = vcmask 523264   ;;  %s1307_s21 = smov [#allocation15]  }
  0x57   :  { %920 = vmatpush3.bf16.msra.mxu0 %v1035_v2  ;;  %v1039_v6 = vld [vmem:[#allocation7 + $0x28] sm:$0xff]   ;;  %v1040_v7 = vld [vmem:[#allocation7 + $0x60] sm:$0xff]   ;;  %v1042_v9 = vld [vmem:[#allocation7 + $0x58] sm:$0xff]   ;;  %980 = vmatprep.mubr.msk.bf16.mxu1 %vm1305_vm0, %v1304_v0  ;;  %s841_s30 = sshll.u32 %s1307_s21, 4  ;;  %s842_s30 = int_to_ptr.vmem [resolvable:$true] %s841_s30 }
  0x58   :  { %921 = vmatprep.subr.bf16.mxu0 %v1036_v3  ;;  %v1041_v8 = vld [vmem:[#allocation7 + $0x20] sm:$0xff]   ;;  %v1043_v10 = vld [vmem:[#allocation7 + $0x18] sm:$0xff]   ;;  %v1044_v11 = vld [vmem:[#allocation7 + $0x50] sm:$0xff]   ;;  %s1241_s4 = scalar_lea.vmem %s842_s30, 512  ;;  %p1246_p8 = scmp.lt.s32.totalorder %s842_s30, %s842_s30 }
  0x59   :  { %v1045_v12 = vld [vmem:[#allocation7 + $0x10] sm:$0xff]   ;;  %v1052_v13 = vld [vmem:[#allocation2 + $0x4] ss:$8 sps:$4 sm:$0xff]   ;;  %v1053_v14 = vld [vmem:[#allocation8 + $0x38] sm:$0xff]   ;;  %p1242_p7 = scmp.ne.s32.totalorder %s842_s30, %s1241_s4  ;;  %p1247_p9 = scmp.lt.s32.totalorder %s1241_s4, %s1241_s4 }
  0x5a   :  { %v1046_v15 = vld [vmem:[#allocation7 + $0x48] sm:$0xff]   ;;  %322 = vmatprep.mubr.bf16.mxu0 %v1052_v13  ;;  %965 = vmatpush3.bf16.msra.mxu1 %v1053_v14  ;;  %v1054_v16 = vld [vmem:[#allocation8 + $0x30] sm:$0xff]   ;;  %v1048_v18 = vld [vmem:[#allocation7 + $0x40] sm:$0xff]  }
  0x5b   :  { %922 = vmatpush3.bf16.msra.mxu0 %v1037_v4  ;;  %v1047_v17 = vld [vmem:[#allocation7 + $0x8] sm:$0xff]   ;;  %966 = vmatprep.subr.bf16.mxu1 %v1304_v0  ;;  %v1049_v20 = vld [vmem:[#allocation7] sm:$0xff]   ;;  %v1057_v23 = vld [vmem:[#allocation8 + $0x18] sm:$0xff]   ;;  %p1248_p10 = por %p1247_p9, %p1246_p8 }
  0x5c   :  { %923 = vmatprep.subr.bf16.mxu0 %v1038_v5  ;;  %v1055_v19 = vld [vmem:[#allocation8 + $0x28] sm:$0xff]   ;;  %v1056_v21 = vld [vmem:[#allocation8 + $0x20] sm:$0xff]   ;;  %v1058_v24 = vld [vmem:[#allocation8 + $0x10] sm:$0xff]  }
  0x5d   :  { %v1050_v22 = vld [vmem:[#allocation2] ss:$8 sps:$4 sm:$0xff]   ;;  %v1061_v39 = vld [vmem:[#allocation10 + $0x18] sm:$0xff]   ;;  %v1062_v40 = vld [vmem:[#allocation10 + $0x10] sm:$0xff]   ;;  %p1249_p11 = pnand %p1248_p10, %p1242_p7 }
  0x5e   :  { %967 = vmatpush3.bf16.msra.mxu1 %v1054_v16  ;;  %v1059_v25 = vld [vmem:[#allocation8 + $0x8] sm:$0xff]   ;;  %v1060_v26 = vld [vmem:[#allocation8] sm:$0xff]   ;;  %v1065_v54 = vld [vmem:[#allocation11 + $0x38] sm:$0xff]  }
  0x5f   :  { %924 = vmatpush3.bf16.msra.mxu0 %v1039_v6  ;;  %968 = vmatprep.subr.bf16.mxu1 %v1304_v0  ;;  %v860_v30 = vld [vmem:[%s1481_s3] ss:$0 sm:$0xff]  ;;  %v1063_v52 = vld [vmem:[#allocation10 + $0x8] sm:$0xff]   ;;  %v1066_v56 = vld [vmem:[#allocation11 + $0x30] sm:$0xff]  }
  0x60   :  { %925 = vmatprep.subr.bf16.mxu0 %v1040_v7  ;;  %v879_v41 = vld [vmem:[%s1483_s5] ss:$0 sm:$0xff]  ;;  %v1067_v58 = vld [vmem:[#allocation11 + $0x28] sm:$0xff]   ;;  %v1069_v60 = vld [vmem:[#allocation11 + $0x18] sm:$0xff]  }
  0x61   :  { %v1064_v53 = vld [vmem:[#allocation10] sm:$0xff]   ;;  %v1070_v61 = vld [vmem:[#allocation11 + $0x10] sm:$0xff]   ;;  %v144_v1 = vld [vmem:[#allocation5 + $0x8] sm:$0xff] }
  0x62   :  { %969 = vmatpush3.bf16.msra.mxu1 %v1055_v19  ;;  %v1068_v59 = vld [vmem:[#allocation11 + $0x20] sm:$0xff]   ;;  %v143_v62 = vld [vmem:[#allocation5] sm:$0xff] }
  0x63   :  { %926 = vmatpush3.bf16.msra.mxu0 %v1041_v8  ;;  %970 = vmatprep.subr.bf16.mxu1 %v1304_v0  ;;  %v1071_v8 = vld [vmem:[#allocation11 + $0x8] sm:$0xff]   ;;  %v1081_v14 = vld [vmem:[#allocation13 + $0x54] ss:$8 sps:$4 sm:$0xff]  }
  0x64   :  { %927 = vmatprep.subr.bf16.mxu0 %v1042_v9  ;;  %v1072_v9 = vld [vmem:[#allocation11] sm:$0xff]  }
  0x65   :  { %v1076_v13 = vld [vmem:[#allocation13 + $0x60] ss:$8 sps:$4 sm:$0xff]   ;;  %v1084_v16 = vld [vmem:[#allocation13 + $0x44] ss:$8 sps:$4 sm:$0xff]  }
  0x66   :  { %971 = vmatpush3.bf16.msra.mxu1 %v1056_v21  ;;  %v1090_v19 = vld [vmem:[#allocation13 + $0x24] ss:$8 sps:$4 sm:$0xff]   ;;  %v888_v21 = vld [vmem:[%s1485_s7] ss:$0 sm:$0xff] }
  0x67   :  { %928 = vmatpush3.bf16.msra.mxu0 %v1043_v10  ;;  %972 = vmatprep.subr.bf16.mxu1 %v1304_v0  ;;  %v1073_v10 = vld [vmem:[#allocation13 + $0x70] ss:$8 sps:$4 sm:$0xff]  }
  0x68   :  { %929 = vmatprep.subr.bf16.mxu0 %v1044_v11  ;;  %v1075_v11 = vld [vmem:[#allocation13 + $0x74] ss:$8 sps:$4 sm:$0xff]  }
  0x6a   :  { %973 = vmatpush3.bf16.msra.mxu1 %v1057_v23 }
  0x6b   :  { %930 = vmatpush3.bf16.msra.mxu0 %v1045_v12  ;;  %974 = vmatprep.subr.bf16.mxu1 %v1304_v0  ;;  %v1078_v12 = vld [vmem:[#allocation13 + $0x64] ss:$8 sps:$4 sm:$0xff]  }
  0x6c   :  { %931 = vmatprep.subr.bf16.mxu0 %v1046_v15  ;;  %v1079_v15 = vld [vmem:[#allocation13 + $0x50] ss:$8 sps:$4 sm:$0xff]  }
  0x6e   :  { %975 = vmatpush3.bf16.msra.mxu1 %v1058_v24 }
  0x6f   :  { %932 = vmatpush3.bf16.msra.mxu0 %v1047_v17  ;;  %976 = vmatprep.subr.bf16.mxu1 %v1304_v0  ;;  %v1082_v17 = vld [vmem:[#allocation13 + $0x40] ss:$8 sps:$4 sm:$0xff]  }
  0x70   :  { %933 = vmatprep.subr.bf16.mxu0 %v1048_v18  ;;  %v1087_v18 = vld [vmem:[#allocation13 + $0x34] ss:$8 sps:$4 sm:$0xff]  }
  0x72   :  { %977 = vmatpush3.bf16.msra.mxu1 %v1059_v25 }
  0x73   :  { %934 = vmatpush3.bf16.msra.mxu0 %v1049_v20  ;;  %978 = vmatprep.subr.bf16.mxu1 %v1304_v0  ;;  %v1088_v20 = vld [vmem:[#allocation13 + $0x20] ss:$8 sps:$4 sm:$0xff]  }
  0x74   :  { %984 = vmatprep.subr.bf16.mxu0 %v1304_v0 }
  0x76   :  { %323 = vmatmul.mubr.bf16.vlgmr.msra.gmra.mxu0 %v1050_v22  ;;  %979 = vmatpush3.bf16.msra.mxu1 %v1060_v26 }
  0x77   :  { %992 = vmatprep.mubr.msk.bf16.mxu0 %vm1305_vm0, %v1304_v0  ;;  %996 = vmatprep.subr.bf16.mxu1 %v1304_v0 }
  0x78   :  { %985 = vmatpush3.bf16.msra.mxu0 %v1061_v39 }
  0x79   :  { %986 = vmatprep.subr.bf16.mxu0 %v1304_v0 }
  0x7c   :  { %987 = vmatpush3.bf16.msra.mxu0 %v1062_v40 }
  0x7d   :  { %988 = vmatprep.subr.bf16.mxu0 %v1304_v0 }
  0x80   :  { %989 = vmatpush3.bf16.msra.mxu0 %v1063_v52 }
  0x81   :  { %990 = vmatprep.subr.bf16.mxu0 %v1304_v0 }
  0x84   :  { %991 = vmatpush3.bf16.msra.mxu0 %v1064_v53 }
  0x85   :  { %773 = vmatprep.subr.bf16.mxu0 %v1075_v11 }
 0x136   :  { %v935_v27 = vpop.f32.mrf.mxu0 }
 0x138   :  { %v936_v28 = vpop.f32.mrf.mxu0 }
 0x139   :  { %v937_v29 = vadd.f32 %v936_v28, %v935_v27 }
 0x13a   :  { %v938_v31 = vpop.f32.mrf.mxu0 }
 0x13b   :  { %v325_v33 = vadd.f32 %v937_v29, %v860_v30  ;;  %v1093_v29 = vld [vmem:[#allocation13 + $0x14] ss:$8 sps:$4 sm:$0xff]  }
 0x13c   :  { %v939_v32 = vpop.f32.mrf.mxu0 }
 0x13d   :  { %v940_v34 = vadd.f32 %v939_v32, %v938_v31  ;;  %v331_v36 = vmax.f32 %v325_v33, 0.0  ;;  %v1096_v31 = vld [vmem:[#allocation13 + $0x4] ss:$8 sps:$4 sm:$0xff]   ;;  %v1094_v32 = vld [vmem:[#allocation13] ss:$8 sps:$4 sm:$0xff]   ;;  %v1306_v33 = vmov 0  }
 0x13f   :  { %v328_v35 = vadd.f32 %v940_v34, %v860_v30  ;;  %v1091_v30 = vld [vmem:[#allocation13 + $0x10] ss:$8 sps:$4 sm:$0xff]   ;;  %v894_v34 = vld [vmem:[%s1487_s9] ss:$0 sm:$0xff] }
 0x141   :  { %v332_v37 = vmax.f32 %v328_v35, 0.0 }
 0x143   :  { %v333_v38 = vpack.c.bf16 %v332_v37, %v331_v36 }
 0x145   :  { %981 = vmatmul.mubr.bf16.vlgmr.msra.gmra.mxu1 %v333_v38 }
 0x146   :  { %1012 = vmatprep.mubr.msk.bf16.mxu1 %vm1305_vm0, %v1304_v0  ;;  %997 = vmatpush3.bf16.msra.mxu1 %v1065_v54 }
 0x147   :  { %998 = vmatprep.subr.bf16.mxu1 %v1304_v0 }
 0x14a   :  { %999 = vmatpush3.bf16.msra.mxu1 %v1066_v56 }
 0x14b   :  { %1000 = vmatprep.subr.bf16.mxu1 %v1304_v0 }
 0x14e   :  { %1001 = vmatpush3.bf16.msra.mxu1 %v1067_v58 }
 0x14f   :  { %1002 = vmatprep.subr.bf16.mxu1 %v1304_v0 }
 0x152   :  { %1003 = vmatpush3.bf16.msra.mxu1 %v1068_v59 }
 0x153   :  { %1004 = vmatprep.subr.bf16.mxu1 %v1304_v0 }
 0x156   :  { %1005 = vmatpush3.bf16.msra.mxu1 %v1069_v60 }
 0x157   :  { %1006 = vmatprep.subr.bf16.mxu1 %v1304_v0 }
 0x15a   :  { %1007 = vmatpush3.bf16.msra.mxu1 %v1070_v61 }
 0x15b   :  { %1008 = vmatprep.subr.bf16.mxu1 %v1304_v0 }
 0x15e   :  { %1009 = vmatpush3.bf16.msra.mxu1 %v1071_v8 }
 0x15f   :  { %1010 = vmatprep.subr.bf16.mxu1 %v1304_v0  ;;  %v1085_v0 = vld [vmem:[#allocation13 + $0x30] ss:$8 sps:$4 sm:$0xff]  }
 0x162   :  { %1011 = vmatpush3.bf16.msra.mxu1 %v1072_v9 }
 0x205   :  { %v439_v42 = vpop.f32.mrf.mxu1 }
 0x206   :  { %v440_v43 = vadd.f32 %v879_v41, %v439_v42 }
 0x207   :  { %v982_v44 = vpop.f32.mrf.mxu1 }
 0x208   :  { %820 = vst [vmem:[#allocation15] sm:$0xff] %v440_v43  ;;  %v446_v45 = vmul.f32 0.5, %v440_v43 }
 0x209   :  { %v442_v46 = vpop.f32.mrf.mxu1 }
 0x20a   :  { %v443_v47 = vadd.f32 %v879_v41, %v442_v46  ;;  %v448_v48 = vmul.f32 1.442695, %v446_v45 }
 0x20b   :  { %v983_v49 = vpop.f32.mrf.mxu1 }
 0x20c   :  { %v447_v50 = vmul.f32 0.5, %v443_v47  ;;  %822 = vst [vmem:[#allocation15 + $0x10] sm:$0xff] %v443_v47  ;;  %1097 = vpow2.f32 %v448_v48 }
 0x20e   :  { %v450_v51 = vmul.f32 1.442695, %v447_v50 }
 0x210   :  { %1099 = vpow2.f32 %v450_v51 }
 0x219   :  { %v1098_v55 = vpop.eup %1097 }
 0x21a   :  { %454 = vrot.lane.b32.xlu0 %v1098_v55, %s1298_s20 }
 0x21d   :  { %v1100_v57 = vpop.eup %1099 }
 0x21e   :  { %456 = vrot.lane.b32.xlu0 %v1100_v57, %s1298_s20 }
 0x28c   :  { %v455_v63 = vpop.permute.xlu0 %454 }
 0x28d   :  { %v460_v2 = vmul.f32 %v455_v63, %v143_v62 }
 0x28f   :  { %v462_v5 = vadd.f32 %v460_v2, %v440_v43 }
 0x290   :  { %v457_v3 = vpop.permute.xlu0 %456 }
 0x291   :  { %v461_v4 = vmul.f32 %v457_v3, %v144_v1 }
 0x293   :  { %v463_v6 = vadd.f32 %v461_v4, %v443_v47 }
 0x295   :  { %v464_v7 = vpack.c.bf16 %v463_v6, %v462_v5 }
 0x297   :  { %993 = vmatmul.mubr.msk.bf16.vlgmr.msra.gmra.mxu0 %vm504_vm1, %v464_v7 }
 0x298   :  { %774 = vmatpush1.bf16.msra.mxu0 %v1073_v10  ;;  %805 = vmatprep.mubr.bf16.mxu0 %v1306_v33 }
 0x299   :  { %775 = vmatprep.subr.bf16.mxu0 %v1078_v12 }
 0x29c   :  { %776 = vmatpush1.bf16.msra.mxu0 %v1076_v13 }
 0x29d   :  { %777 = vmatprep.subr.bf16.mxu0 %v1081_v14 }
 0x2a0   :  { %778 = vmatpush1.bf16.msra.mxu0 %v1079_v15 }
 0x2a1   :  { %779 = vmatprep.subr.bf16.mxu0 %v1084_v16 }
 0x2a4   :  { %780 = vmatpush1.bf16.msra.mxu0 %v1082_v17 }
 0x2a5   :  { %781 = vmatprep.subr.bf16.mxu0 %v1087_v18 }
 0x2a8   :  { %782 = vmatpush1.bf16.msra.mxu0 %v1085_v0 }
 0x2a9   :  { %783 = vmatprep.subr.bf16.mxu0 %v1090_v19 }
 0x2ac   :  { %784 = vmatpush1.bf16.msra.mxu0 %v1088_v20 }
 0x2ad   :  { %785 = vmatprep.subr.bf16.mxu0 %v1093_v29 }
 0x2b0   :  { %786 = vmatpush1.bf16.msra.mxu0 %v1091_v30 }
 0x2b1   :  { %787 = vmatprep.subr.bf16.mxu0 %v1096_v31 }
 0x2b4   :  { %788 = vmatpush1.bf16.msra.mxu0 %v1094_v32 }
 0x357   :  { %v542_v22 = vpop.f32.mrf.mxu0 }
 0x358   :  { %v543_v23 = vadd.f32 %v888_v21, %v542_v22 }
 0x359   :  { %v994_v24 = vpop.f32.mrf.mxu0 }
 0x35a   :  { %821 = vst [vmem:[#allocation15 + $0x8] sm:$0xff] %v543_v23 }
 0x35b   :  { %v545_v25 = vpop.f32.mrf.mxu0 }
 0x35c   :  { %v546_v26 = vadd.f32 %v888_v21, %v545_v25 }
 0x35d   :  { %v995_v27 = vpop.f32.mrf.mxu0 }
 0x35e   :  { %v549_v28 = vpack.c.bf16 %v546_v26, %v543_v23  ;;  %823 = vst [vmem:[#allocation15 + $0x18] sm:$0xff] %v546_v26 }
 0x360   :  { %1013 = vmatmul.mubr.bf16.vlgmr.msra.gmra.mxu1 %v549_v28 }
 0x420   :  { %v655_v35 = vpop.f32.mrf.mxu1 }
 0x421   :  { %v656_v37 = vadd.f32 %v894_v34, %v655_v35 }
 0x422   :  { %v1014_v36 = vpop.f32.mrf.mxu1 }
 0x423   :  { %v662_v41 = vmax.f32 %v656_v37, 0.0 }
 0x424   :  { %v658_v38 = vpop.f32.mrf.mxu1 }
 0x425   :  { %v659_v39 = vadd.f32 %v894_v34, %v658_v38 }
 0x426   :  { %v1015_v40 = vpop.f32.mrf.mxu1 }
 0x427   :  { %v663_v42 = vmax.f32 %v659_v39, 0.0 }
 0x429   :  { %v664_v43 = vpack.c.bf16 %v663_v42, %v662_v41 }
 0x42b   :  { %806 = vmatmul.mubr.bf16.vlgmr.msra.gmra.mxu0 %v664_v43 }
 0x42c   :  { %1252 = shalt.err (!%p1249_p11)
}
 0x42d   :  { %s1308_s9 = smov 256   ;;  %s1309_s14 = smov 16   ;;  %v683_v44 = vlaneseq  ;;  %v681_v47 = vld [vmem:[%s1489_s11] sm:$0x3] }
 0x42e   :  { %847 = dma.vmem_to_hbm [thread:$0]  %s842_s30, 512, %s1491_s13, [#allocation16], %s1308_s9, %s1308_s9, %s1309_s14  }
 0x42f   :  { %v684_v45 = vshrl.u32 %v683_v44, 7  ;;  %s1310_s18 = smov [#allocation14]  }
 0x430   :  { %s829_s19 = sshll.u32 %s1310_s18, 4  ;;  %s830_s19 = int_to_ptr.vmem [resolvable:$true] %s829_s19 }
 0x431   :  { %v685_v46 = vsub.s32 0, %v684_v45  ;;  %v689_v48 = vsub.s32 1, %v684_v45  ;;  %s1261_s13 = scalar_lea.vmem %s830_s19, 512  ;;  %p1266_p13 = scmp.lt.s32.totalorder %s830_s19, %s830_s19 }
 0x432   :  { %p1262_p12 = scmp.ne.s32.totalorder %s830_s19, %s1261_s13  ;;  %p1267_p0 = scmp.lt.s32.totalorder %s1261_s13, %s1261_s13 }
 0x433   :  { %v686_v49 = vrot.slane %v681_v47, %v685_v46  ;;  %v690_v50 = vrot.slane %v681_v47, %v689_v48 }
 0x434   :  { %p1268_p1 = por %p1267_p0, %p1266_p13 }
 0x436   :  { %p1269_p2 = pnand %p1268_p1, %p1262_p12 }
 0x4eb   :  { %v807_v51 = vpop.f32.mrf.mxu0 }
 0x4ec   :  { %v808_v52 = vadd.f32 %v807_v51, %v686_v49 }
 0x4ed   :  { %v809_v53 = vpop.f32.mrf.mxu0 }
 0x4ee   :  { %816 = vst [vmem:[#allocation14] sm:$0xff] %v808_v52  ;;  %v810_v54 = vadd.f32 %v809_v53, %v690_v50 }
 0x4ef   :  { %v811_v55 = vpop.f32.mrf.mxu0 }
 0x4f0   :  { %817 = vst [vmem:[#allocation14 + $0x8] sm:$0xff] %v810_v54  ;;  %v812_v56 = vadd.f32 %v811_v55, %v686_v49 }
 0x4f1   :  { %v813_v57 = vpop.f32.mrf.mxu0 }
 0x4f2   :  { %818 = vst [vmem:[#allocation14 + $0x10] sm:$0xff] %v812_v56  ;;  %v814_v58 = vadd.f32 %v813_v57, %v690_v50 }
 0x4f4   :  { %819 = vst [vmem:[#allocation14 + $0x18] sm:$0xff] %v814_v58 }
 0x4f5   :  { %1272 = shalt.err (!%p1269_p2)
}
 0x4f6   :  { %835 = dma.vmem_to_hbm [thread:$0]  %s830_s19, 512, %s1490_s12, [#allocation4], %s1308_s9, %s1308_s9, %s1309_s14  }
 0x4f7   :  { %1289 = dma.done.wait [#allocation4], 512  }
 0x4f8   :  { %1290 = vsyncadd [#allocation4], 4294966784 }
 0x4f9   :  { %1291 = dma.done.wait [#allocation16], 512  }
 0x4fa   :  { %1292 = vsyncadd [#allocation16], 4294966784 }
 0x4fb   :  { %854 = vsyncpa [#allocation3], 1 }
 0x4fc   :  { %855 = vsyncpa [#allocation6], 1 }
 0x4fd   :  { %856 = vsyncpa [#allocation9], 1 }
 0x4fe   :  { %857 = vsyncpa [#allocation12], 1 }
 0x4ff   :  { %858 = vsyncpa [#allocation4], 1 }
 0x500   :  { %859 = vsyncpa [#allocation16], 1 }

</bundles_post_ra>
